<compile_context>
chip_gen: v6e
topology: v6e:2x2x1
jax: 0.10.0
libtpu: 0.0.40
codegen_flags: <defaults>
</compile_context>

<pallas_src>
import functools

import jax
import jax.numpy as jnp
from jax.experimental import pallas as pl
from jax.experimental.pallas import tpu as pltpu


def classifier_kernel(x_ref, w1_ref, b1_ref, w2_ref, b2_ref, o_ref):
    # In-kernel f32 -> bf16 cast of the activation tile (free under MXU slack).
    x = x_ref[...].astype(jnp.bfloat16)
    # Linear 1 (bf16 MXU inputs, f32 accumulation) + folded BN/bias affine.
    h = jnp.dot(x, w1_ref[...], preferred_element_type=jnp.float32)
    h = h + b1_ref[...]
    # Dropout(p) in eval mode == identity; ReLU in f32 (safe on v5e too).
    h = jnp.maximum(h, 0.0)
    # Linear 2 (bf16 MXU inputs, f32 accumulation) + bias.
    out = jnp.dot(h.astype(jnp.bfloat16), w2_ref[...],
                  preferred_element_type=jnp.float32)
    o_ref[...] = (out + b2_ref[...]).astype(o_ref.dtype)


def _round_up(x, m):
    return ((x + m - 1) // m) * m


def _num_tensorcores():
    """Heuristic: dual-TC megacore chips (v7x / v4) vs single-TC (v5e / v6e)."""
    try:
        dk = jax.devices()[0].device_kind.lower()
    except Exception:
        return 1
    return 2 if any(t in dk for t in ("v7", "7x", "v4")) else 1


def pick_block_b(B, num_cores):
    """Single grid step on single-TC chips for small B; exactly `num_cores`
    parallel steps on dual-TC chips; cap tiles at 1024 rows for large B."""
    Bp = _round_up(B, 16)
    if num_cores >= 2 and B >= 32:
        blk = _round_up(pl.cdiv(Bp, num_cores), 16)
    else:
        blk = Bp
    return min(blk, 1024)


def fold_params(w1, b1, bn_scale, bn_shift, w2, b2):
    """One-time weight prep (NOT in the per-call hot path).

    Folds eval-mode BatchNorm into the first linear:
      y = (x@W1 + b1) * s + t  ==  x @ (W1*s) + (b1*s + t)
    and casts the matmul operands to bf16 for the MXU.
    """
    s = bn_scale.astype(jnp.float32)
    t = bn_shift.astype(jnp.float32)
    w1f = (w1.astype(jnp.float32) * s).astype(jnp.bfloat16)          # (F, H) bf16
    b1f = (b1.astype(jnp.float32) * s + t).astype(jnp.float32)       # (1, H) f32
    w2f = w2.astype(jnp.bfloat16)                                    # (H, C) bf16
    b2f = b2.astype(jnp.float32)                                     # (1, C) f32
    return w1f, b1f, w2f, b2f


@functools.partial(jax.jit, static_argnames=("block_b",))
def simple_classifier(x, w1f, b1f, w2f, b2f, *, block_b=128):
    """Fused eval-mode forward. x: (B, F) f32; folded weights from fold_params."""
    B, F = x.shape
    H = w1f.shape[1]
    C = w2f.shape[1]

    grid = (pl.cdiv(B, block_b),)

    cost = pl.CostEstimate(
        flops=2 * B * (F * H + H * C),
        transcendentals=0,
        bytes_accessed=(B * F * 4 + B * C * 4            # x in, out written
                        + F * H * 2 + H * C * 2          # bf16 weights
                        + (H + C) * 4),                  # f32 biases
    )

    # TODO(synk): if F/H ever scale up (e.g. H=2000+ with large F), add a VMEM guard
    # (single-buffer the constant-index weight blocks / raise vmem_limit_bytes or
    # tile H) for v7x's 64 MiB VMEM; at these sizes the resident weights are ~0.04 MiB.
    out = pl.pallas_call(
        classifier_kernel,
        out_shape=jax.ShapeDtypeStruct((B, C), jnp.float32),
        grid=grid,
        in_specs=[
            pl.BlockSpec((block_b, F), lambda i: (i, 0)),   # x tile over batch (f32)
            pl.BlockSpec((F, H), lambda i: (0, 0)),         # W1' folded (resident, bf16)
            pl.BlockSpec((1, H), lambda i: (0, 0)),         # folded bias (f32)
            pl.BlockSpec((H, C), lambda i: (0, 0)),         # W2 (resident, bf16)
            pl.BlockSpec((1, C), lambda i: (0, 0)),         # b2 (f32)
        ],
        out_specs=pl.BlockSpec((block_b, C), lambda i: (i, 0)),
        compiler_params=pltpu.CompilerParams(
            dimension_semantics=("parallel",),
        ),
        cost_estimate=cost,
    )(x, w1f, b1f, w2f, b2f)

    return out.astype(x.dtype)


def init_params(key, num_features, num_hidden, num_classes, dtype=jnp.float32):
    """Deterministic PyTorch-style init (U(-1/sqrt(fan_in), 1/sqrt(fan_in)) for Linear)."""
    k1, k2, k3, k4, k5, k6 = jax.random.split(key, 6)

    bound1 = 1.0 / jnp.sqrt(num_features)
    w1 = jax.random.uniform(k1, (num_features, num_hidden), dtype, -bound1, bound1)
    b1 = jax.random.uniform(k2, (1, num_hidden), dtype, -bound1, bound1)

    bound2 = 1.0 / jnp.sqrt(num_hidden)
    w2 = jax.random.uniform(k3, (num_hidden, num_classes), dtype, -bound2, bound2)
    b2 = jax.random.uniform(k4, (1, num_classes), dtype, -bound2, bound2)

    # BatchNorm1d parameters + (synthetic, nontrivial) running statistics.
    gamma = jnp.ones((1, num_hidden), dtype)
    beta = jnp.zeros((1, num_hidden), dtype)
    running_mean = 0.1 * jax.random.normal(k5, (1, num_hidden), dtype)
    running_var = 1.0 + 0.1 * jax.random.uniform(k6, (1, num_hidden), dtype)
    eps = 1e-5

    # Eval-mode BN as a per-feature affine.
    bn_scale = gamma / jnp.sqrt(running_var + eps)
    bn_shift = beta - running_mean * bn_scale
    return w1, b1, bn_scale, bn_shift, w2, b2


def reference(x, w1, b1, bn_scale, bn_shift, w2, b2):
    h = x @ w1 + b1
    h = h * bn_scale + bn_shift
    h = jnp.maximum(h, 0.0)
    return h @ w2 + b2


if __name__ == "__main__":
    # Small shapes consistent with the module: NUM_FEATURES=32, num_hidden=128,
    # NUM_CLASSES=16; batch big enough to exercise the multi-step grid path on v7x.
    B, F, H, C = 256, 32, 128, 16

    key = jax.random.PRNGKey(0)
    kx, kp = jax.random.split(key)
    x = jax.random.normal(kx, (B, F), jnp.float32)
    raw_params = init_params(kp, F, H, C)

    # One-time weight prep (hoisted out of the per-call hot path).
    folded = jax.block_until_ready(fold_params(*raw_params))

    block_b = pick_block_b(B, _num_tensorcores())
    out = simple_classifier(x, *folded, block_b=block_b)
    out = jax.block_until_ready(out)

    ref = reference(x, *raw_params)
    assert out.shape == (B, C)
    # bf16 MXU inputs with f32 accumulation -> loose tolerance vs. full-f32 reference.
    assert jnp.allclose(out, ref, atol=2e-2, rtol=2e-2), float(jnp.max(jnp.abs(out - ref)))

    # TODO(synk): training-mode Dropout/BatchNorm (batch statistics + RNG mask) not
    # implemented; inference semantics only. Re-run fold_params if running stats change.
    print("KERNEL_OK")
</pallas_src>

<mosaic_0001>
module attributes {stable_mosaic.version = 11 : i64} {
  func.func @classifier_kernel(%arg0: i32, %arg1: memref<256x32xf32, #tpu.memory_space<vmem>>, %arg2: memref<32x128xbf16, #tpu.memory_space<vmem>>, %arg3: memref<1x128xf32, #tpu.memory_space<vmem>>, %arg4: memref<128x16xbf16, #tpu.memory_space<vmem>>, %arg5: memref<1x16xf32, #tpu.memory_space<vmem>>, %arg6: memref<256x16xf32, #tpu.memory_space<vmem>>) attributes {dimension_semantics = [#tpu.dimension_semantics<parallel>], iteration_bounds = array<i64: 1>, scalar_prefetch = 0 : i64, scratch_operands = 0 : i64, tpu.core_type = #tpu.core_type<tc>, window_params = [{transform_indices = @transform_0, window_bounds = array<i64: 256, 32>}, {pipeline_mode = #tpu.pipeline_mode<synchronous>, transform_indices = @transform_1, window_bounds = array<i64: 32, 128>}, {pipeline_mode = #tpu.pipeline_mode<synchronous>, transform_indices = @transform_2, window_bounds = array<i64: 1, 128>}, {pipeline_mode = #tpu.pipeline_mode<synchronous>, transform_indices = @transform_3, window_bounds = array<i64: 128, 16>}, {pipeline_mode = #tpu.pipeline_mode<synchronous>, transform_indices = @transform_4, window_bounds = array<i64: 1, 16>}, {transform_indices = @transform_5, window_bounds = array<i64: 256, 16>}]} {
    %c0 = arith.constant 0 : index
    %c0_0 = arith.constant 0 : index
    %0 = vector.load %arg1[%c0, %c0_0] : memref<256x32xf32, #tpu.memory_space<vmem>>, vector<256x32xf32>
    %1 = arith.truncf %0 : vector<256x32xf32> to vector<256x32xbf16>
    %c0_1 = arith.constant 0 : index
    %c0_2 = arith.constant 0 : index
    %2 = vector.load %arg2[%c0_1, %c0_2] : memref<32x128xbf16, #tpu.memory_space<vmem>>, vector<32x128xbf16>
    %cst = arith.constant dense<0.000000e+00> : vector<256x128xf32>
    %3 = tpu.matmul %1, %2, %cst {dimension_numbers = #tpu.dot_dimension_numbers<[1], [0], [0], [1], [0, 0, 1, 1], [], []>} : vector<256x32xbf16>, vector<32x128xbf16>, vector<256x128xf32> -> vector<256x128xf32>
    %c0_3 = arith.constant 0 : index
    %c0_4 = arith.constant 0 : index
    %4 = vector.load %arg3[%c0_3, %c0_4] : memref<1x128xf32, #tpu.memory_space<vmem>>, vector<1x128xf32>
    %5 = vector.broadcast %4 : vector<1x128xf32> to vector<256x128xf32>
    %6 = arith.addf %3, %5 : vector<256x128xf32>
    %cst_5 = arith.constant 0.000000e+00 : f32
    %7 = vector.broadcast %cst_5 : f32 to vector<256x128xf32>
    %8 = arith.maximumf %6, %7 : vector<256x128xf32>
    %9 = arith.truncf %8 : vector<256x128xf32> to vector<256x128xbf16>
    %c0_6 = arith.constant 0 : index
    %c0_7 = arith.constant 0 : index
    %10 = vector.load %arg4[%c0_6, %c0_7] : memref<128x16xbf16, #tpu.memory_space<vmem>>, vector<128x16xbf16>
    %cst_8 = arith.constant dense<0.000000e+00> : vector<256x16xf32>
    %11 = tpu.matmul %9, %10, %cst_8 {dimension_numbers = #tpu.dot_dimension_numbers<[1], [0], [0], [1], [0, 0, 1, 1], [], []>} : vector<256x128xbf16>, vector<128x16xbf16>, vector<256x16xf32> -> vector<256x16xf32>
    %c0_9 = arith.constant 0 : index
    %c0_10 = arith.constant 0 : index
    %12 = vector.load %arg5[%c0_9, %c0_10] : memref<1x16xf32, #tpu.memory_space<vmem>>, vector<1x16xf32>
    %13 = vector.broadcast %12 : vector<1x16xf32> to vector<256x16xf32>
    %14 = arith.addf %11, %13 : vector<256x16xf32>
    %c0_11 = arith.constant 0 : index
    %c0_12 = arith.constant 0 : index
    %15 = vector.load %arg6[%c0_11, %c0_12] : memref<256x16xf32, #tpu.memory_space<vmem>>, vector<256x16xf32>
    tpu.vector_store %arg6[%c0_11, %c0_12], %14 {strides = array<i32>} : memref<256x16xf32, #tpu.memory_space<vmem>>, vector<256x16xf32>,
    return
  }
  func.func @transform_0(%arg0: i32) -> (i32, i32) {
    %c0_i32 = arith.constant 0 : i32
    %c0_i32_0 = arith.constant 0 : i32
    return %arg0, %c0_i32 : i32, i32
  }
  func.func @transform_1(%arg0: i32) -> (i32, i32) {
    %c0_i32 = arith.constant 0 : i32
    %c0_i32_0 = arith.constant 0 : i32
    %c0_i32_1 = arith.constant 0 : i32
    return %c0_i32, %c0_i32_0 : i32, i32
  }
  func.func @transform_2(%arg0: i32) -> (i32, i32) {
    %c0_i32 = arith.constant 0 : i32
    %c0_i32_0 = arith.constant 0 : i32
    %c0_i32_1 = arith.constant 0 : i32
    return %c0_i32, %c0_i32_0 : i32, i32
  }
  func.func @transform_3(%arg0: i32) -> (i32, i32) {
    %c0_i32 = arith.constant 0 : i32
    %c0_i32_0 = arith.constant 0 : i32
    %c0_i32_1 = arith.constant 0 : i32
    return %c0_i32, %c0_i32_0 : i32, i32
  }
  func.func @transform_4(%arg0: i32) -> (i32, i32) {
    %c0_i32 = arith.constant 0 : i32
    %c0_i32_0 = arith.constant 0 : i32
    %c0_i32_1 = arith.constant 0 : i32
    return %c0_i32, %c0_i32_0 : i32, i32
  }
  func.func @transform_5(%arg0: i32) -> (i32, i32) {
    %c0_i32 = arith.constant 0 : i32
    %c0_i32_0 = arith.constant 0 : i32
    return %arg0, %c0_i32 : i32, i32
  }
}

</mosaic_0001>

<bundles_post_ra>
// kernel: simple_classifier.1
= control target key start
LH: loop header
LB: loop body
LE: loop exit
PB: predicated region body
PF: predicated region fallthrough
CT: control target
= control target key end

     0   :  { %vm92_vm0 = vcmask 261120   ;;  %vm582_vm1 = vcmask 130048   ;;  %s1173_s1 = inlined_call_operand.vmem [shape: bf16[32,128], index: 1, kind: input, shape index: {}]   ;;  %s1174_s0 = inlined_call_operand.vmem [shape: f32[256,32], index: 0, kind: input, shape index: {}]   ;;  %s1175_s3 = inlined_call_operand.vmem [shape: bf16[128,16], index: 3, kind: input, shape index: {}]   ;;  %s1176_s2 = inlined_call_operand.vmem [shape: f32[1,128], index: 2, kind: input, shape index: {}]   ;;  %s1177_s4 = inlined_call_operand.vmem [shape: f32[1,16], index: 4, kind: input, shape index: {}]   ;;  %s1178_s5 = inlined_call_operand.vmem [shape: f32[256,16], index: 5, kind: output, shape index: {}]  }
   0x1   :  { %v789_v0 = vld [vmem:[%s1173_s1 + $0x8] sm:$0xff]   ;;  %v790_v1 = vld [vmem:[%s1173_s1] sm:$0xff]   ;;  %v23_v5 = vld [vmem:[%s1174_s0 + $0x10] sm:$0xff] }
   0x2   :  { %689 = vmatprep.subr.bf16.mxu0 %v789_v0  ;;  %v21_v2 = vld [vmem:[%s1174_s0] sm:$0xff]  ;;  %v22_v3 = vld [vmem:[%s1174_s0 + $0x8] sm:$0xff]  ;;  %v24_v6 = vld [vmem:[%s1174_s0 + $0x18] sm:$0xff] }
   0x3   :  { %690 = vmatpush3.bf16.msra.mxu0 %v789_v0  ;;  %v53_v4 = vpack.c.bf16 %v22_v3, %v21_v2  ;;  %v25_v7 = vld [vmem:[%s1174_s0 + $0x20] sm:$0xff]  ;;  %v26_v8 = vld [vmem:[%s1174_s0 + $0x28] sm:$0xff]  ;;  %v54_v9 = vpack.c.bf16 %v24_v6, %v23_v5  ;;  %v27_v11 = vld [vmem:[%s1174_s0 + $0x30] sm:$0xff] }
   0x4   :  { %691 = vmatprep.subr.bf16.mxu0 %v790_v1  ;;  %v55_v10 = vpack.c.bf16 %v26_v8, %v25_v7  ;;  %v28_v12 = vld [vmem:[%s1174_s0 + $0x38] sm:$0xff]  ;;  %v29_v13 = vld [vmem:[%s1174_s0 + $0x40] sm:$0xff]  ;;  %v30_v14 = vld [vmem:[%s1174_s0 + $0x48] sm:$0xff] }
   0x5   :  { %693 = vmatprep.mubr.msk.bf16.mxu0 %vm92_vm0, %v53_v4  ;;  %v791_v15 = vld [vmem:[%s1175_s3 + $0x38] sm:$0xff]   ;;  %v56_v16 = vpack.c.bf16 %v28_v12, %v27_v11  ;;  %v792_v17 = vld [vmem:[%s1175_s3 + $0x30] sm:$0xff]   ;;  %v57_v18 = vpack.c.bf16 %v30_v14, %v29_v13  ;;  %v793_v20 = vld [vmem:[%s1175_s3 + $0x28] sm:$0xff]  }
   0x6   :  { %773 = vmatprep.subr.bf16.mxu1 %v791_v15  ;;  %v31_v19 = vld [vmem:[%s1174_s0 + $0x50] sm:$0xff]  ;;  %v32_v21 = vld [vmem:[%s1174_s0 + $0x58] sm:$0xff]  ;;  %v33_v22 = vld [vmem:[%s1174_s0 + $0x60] sm:$0xff] }
   0x7   :  { %692 = vmatpush3.bf16.msra.mxu0 %v790_v1  ;;  %781 = vmatpush3.bf16.msra.mxu1 %v791_v15  ;;  %v34_v23 = vld [vmem:[%s1174_s0 + $0x68] sm:$0xff]  ;;  %v794_v24 = vld [vmem:[%s1175_s3 + $0x20] sm:$0xff]   ;;  %v58_v25 = vpack.c.bf16 %v32_v21, %v31_v19  ;;  %v795_v27 = vld [vmem:[%s1175_s3 + $0x18] sm:$0xff]  }
   0x8   :  { %725 = vmatprep.subr.bf16.mxu0 %v791_v15  ;;  %774 = vmatprep.subr.bf16.mxu1 %v792_v17  ;;  %v59_v26 = vpack.c.bf16 %v34_v23, %v33_v22  ;;  %v35_v28 = vld [vmem:[%s1174_s0 + $0x70] sm:$0xff]  ;;  %v36_v29 = vld [vmem:[%s1174_s0 + $0x78] sm:$0xff]  ;;  %v37_v30 = vld [vmem:[%s1174_s0 + $0x80] sm:$0xff] }
   0x9   :  { %v38_v31 = vld [vmem:[%s1174_s0 + $0x88] sm:$0xff]  ;;  %v60_v32 = vpack.c.bf16 %v36_v29, %v35_v28  ;;  %v39_v34 = vld [vmem:[%s1174_s0 + $0x90] sm:$0xff]  ;;  %v40_v35 = vld [vmem:[%s1174_s0 + $0x98] sm:$0xff] }
   0xa   :  { %694 = vmatmul.mubr.msk.bf16.vlgmr.msra.gmra.mxu0 %vm92_vm0, %v54_v9  ;;  %v61_v33 = vpack.c.bf16 %v38_v31, %v37_v30  ;;  %v41_v36 = vld [vmem:[%s1174_s0 + $0xa0] sm:$0xff]  ;;  %v42_v37 = vld [vmem:[%s1174_s0 + $0xa8] sm:$0xff]  ;;  %v62_v38 = vpack.c.bf16 %v40_v35, %v39_v34  ;;  %v43_v40 = vld [vmem:[%s1174_s0 + $0xb0] sm:$0xff] }
   0xb   :  { %697 = vmatprep.mubr.msk.bf16.mxu0 %vm92_vm0, %v55_v10  ;;  %726 = vmatpush3.bf16.msra.mxu0 %v791_v15  ;;  %v63_v39 = vpack.c.bf16 %v42_v37, %v41_v36  ;;  %v44_v41 = vld [vmem:[%s1174_s0 + $0xb8] sm:$0xff]  ;;  %v45_v42 = vld [vmem:[%s1174_s0 + $0xc0] sm:$0xff]  ;;  %v46_v43 = vld [vmem:[%s1174_s0 + $0xc8] sm:$0xff] }
   0xc   :  { %727 = vmatprep.subr.bf16.mxu0 %v792_v17  ;;  %782 = vmatpush3.bf16.msra.mxu1 %v792_v17  ;;  %v64_v44 = vpack.c.bf16 %v44_v41, %v43_v40  ;;  %v65_v45 = vpack.c.bf16 %v46_v43, %v45_v42  ;;  %v47_v46 = vld [vmem:[%s1174_s0 + $0xd0] sm:$0xff]  ;;  %v48_v47 = vld [vmem:[%s1174_s0 + $0xd8] sm:$0xff]  ;;  %v49_v48 = vld [vmem:[%s1174_s0 + $0xe0] sm:$0xff] }
   0xd   :  { %775 = vmatprep.subr.bf16.mxu1 %v793_v20  ;;  %v50_v49 = vld [vmem:[%s1174_s0 + $0xe8] sm:$0xff]  ;;  %v66_v50 = vpack.c.bf16 %v48_v47, %v47_v46  ;;  %v51_v52 = vld [vmem:[%s1174_s0 + $0xf0] sm:$0xff]  ;;  %v52_v53 = vld [vmem:[%s1174_s0 + $0xf8] sm:$0xff] }
   0xe   :  { %v67_v51 = vpack.c.bf16 %v50_v49, %v49_v48  ;;  %v68_v54 = vpack.c.bf16 %v52_v53, %v51_v52  ;;  %v796_v55 = vld [vmem:[%s1175_s3 + $0x10] sm:$0xff]   ;;  %v797_v56 = vld [vmem:[%s1175_s3 + $0x8] sm:$0xff]   ;;  %v798_v57 = vld [vmem:[%s1175_s3] sm:$0xff]  }
   0xf   :  { %728 = vmatpush3.bf16.msra.mxu0 %v792_v17  ;;  %v974_v60 = vld [vmem:[%s1176_s2] ss:$0 sm:$0xff] }
  0x10   :  { %729 = vmatprep.subr.bf16.mxu0 %v793_v20  ;;  %783 = vmatpush3.bf16.msra.mxu1 %v793_v20 }
  0x11   :  { %776 = vmatprep.subr.bf16.mxu1 %v794_v24 }
  0x12   :  { %698 = vmatmul.mubr.msk.bf16.gmra.mxu0 %vm92_vm0, %v56_v16 }
  0x13   :  { %701 = vmatprep.mubr.msk.bf16.mxu0 %vm92_vm0, %v57_v18  ;;  %730 = vmatpush3.bf16.msra.mxu0 %v793_v20 }
  0x14   :  { %731 = vmatprep.subr.bf16.mxu0 %v794_v24  ;;  %784 = vmatpush3.bf16.msra.mxu1 %v794_v24 }
  0x15   :  { %777 = vmatprep.subr.bf16.mxu1 %v795_v27 }
  0x17   :  { %732 = vmatpush3.bf16.msra.mxu0 %v794_v24 }
  0x18   :  { %733 = vmatprep.subr.bf16.mxu0 %v795_v27  ;;  %785 = vmatpush3.bf16.msra.mxu1 %v795_v27 }
  0x19   :  { %778 = vmatprep.subr.bf16.mxu1 %v796_v55 }
  0x1a   :  { %702 = vmatmul.mubr.msk.bf16.gmra.mxu0 %vm92_vm0, %v58_v25 }
  0x1b   :  { %705 = vmatprep.mubr.msk.bf16.mxu0 %vm92_vm0, %v59_v26  ;;  %734 = vmatpush3.bf16.msra.mxu0 %v795_v27 }
  0x1c   :  { %735 = vmatprep.subr.bf16.mxu0 %v796_v55  ;;  %786 = vmatpush3.bf16.msra.mxu1 %v796_v55 }
  0x1d   :  { %779 = vmatprep.subr.bf16.mxu1 %v797_v56 }
  0x1f   :  { %736 = vmatpush3.bf16.msra.mxu0 %v796_v55 }
  0x20   :  { %737 = vmatprep.subr.bf16.mxu0 %v797_v56  ;;  %787 = vmatpush3.bf16.msra.mxu1 %v797_v56 }
  0x21   :  { %780 = vmatprep.subr.bf16.mxu1 %v798_v57 }
  0x22   :  { %706 = vmatmul.mubr.msk.bf16.gmra.mxu0 %vm92_vm0, %v60_v32 }
  0x23   :  { %709 = vmatprep.mubr.msk.bf16.mxu0 %vm92_vm0, %v61_v33  ;;  %738 = vmatpush3.bf16.msra.mxu0 %v797_v56 }
  0x24   :  { %739 = vmatprep.subr.bf16.mxu0 %v798_v57  ;;  %788 = vmatpush3.bf16.msra.mxu1 %v798_v57 }
  0x27   :  { %740 = vmatpush3.bf16.msra.mxu0 %v798_v57 }
  0x2a   :  { %710 = vmatmul.mubr.msk.bf16.gmra.mxu0 %vm92_vm0, %v62_v38 }
  0x2b   :  { %713 = vmatprep.mubr.msk.bf16.mxu0 %vm92_vm0, %v63_v39 }
  0x32   :  { %714 = vmatmul.mubr.msk.bf16.gmra.mxu0 %vm92_vm0, %v64_v44 }
  0x33   :  { %717 = vmatprep.mubr.msk.bf16.mxu0 %vm92_vm0, %v65_v45 }
  0x3a   :  { %718 = vmatmul.mubr.msk.bf16.gmra.mxu0 %vm92_vm0, %v66_v50 }
  0x3b   :  { %721 = vmatprep.mubr.msk.bf16.mxu0 %vm92_vm0, %v67_v51 }
  0x42   :  { %722 = vmatmul.mubr.msk.bf16.gmra.mxu0 %vm92_vm0, %v68_v54 }
  0xca   :  { %v695_v58 = vpop.f32.mrf.mxu0 }
  0xcb   :  { %v184_v0 = vadd.f32 %v695_v58, %v974_v60 }
  0xcc   :  { %v175_v59 = vpop.f32.mrf.mxu0 }
  0xcd   :  { %v176_v62 = vadd.f32 %v974_v60, %v175_v59  ;;  %v304_v7 = vmax.f32 %v184_v0, 0.0 }
  0xce   :  { %v696_v61 = vpop.f32.mrf.mxu0 }
  0xcf   :  { %v187_v63 = vadd.f32 %v696_v61, %v974_v60  ;;  %v302_v5 = vmax.f32 %v176_v62, 0.0 }
  0xd0   :  { %v178_v1 = vpop.f32.mrf.mxu0 }
  0xd1   :  { %v179_v2 = vadd.f32 %v974_v60, %v178_v1  ;;  %v305_v3 = vmax.f32 %v187_v63, 0.0 }
  0xd2   :  { %v699_v4 = vpop.f32.mrf.mxu0 }
  0xd3   :  { %v303_v6 = vmax.f32 %v179_v2, 0.0  ;;  %v335_v10 = vpack.c.bf16 %v305_v3, %v304_v7  ;;  %v200_v14 = vadd.f32 %v699_v4, %v974_v60 }
  0xd4   :  { %v191_v8 = vpop.f32.mrf.mxu0 }
  0xd5   :  { %v334_v9 = vpack.c.bf16 %v303_v6, %v302_v5  ;;  %v192_v12 = vadd.f32 %v974_v60, %v191_v8  ;;  %v308_v21 = vmax.f32 %v200_v14, 0.0 }
  0xd6   :  { %v700_v11 = vpop.f32.mrf.mxu0 }
  0xd7   :  { %v203_v13 = vadd.f32 %v700_v11, %v974_v60  ;;  %741 = vmatprep.mubr.bf16.mxu0 %v334_v9  ;;  %v306_v19 = vmax.f32 %v192_v12, 0.0 }
  0xd8   :  { %v194_v15 = vpop.f32.mrf.mxu0  ;;  %742 = vmatmul.mubr.bf16.vlgmr.msra.gmra.mxu0 %v335_v10 }
  0xd9   :  { %v195_v16 = vadd.f32 %v974_v60, %v194_v15  ;;  %v309_v17 = vmax.f32 %v203_v13, 0.0 }
  0xda   :  { %v703_v18 = vpop.f32.mrf.mxu0 }
  0xdb   :  { %v307_v20 = vmax.f32 %v195_v16, 0.0  ;;  %v337_v24 = vpack.c.bf16 %v309_v17, %v308_v21  ;;  %v216_v28 = vadd.f32 %v703_v18, %v974_v60 }
  0xdc   :  { %v207_v22 = vpop.f32.mrf.mxu0 }
  0xdd   :  { %v336_v23 = vpack.c.bf16 %v307_v20, %v306_v19  ;;  %v208_v26 = vadd.f32 %v974_v60, %v207_v22  ;;  %v312_v35 = vmax.f32 %v216_v28, 0.0 }
  0xde   :  { %v704_v25 = vpop.f32.mrf.mxu0 }
  0xdf   :  { %v219_v27 = vadd.f32 %v704_v25, %v974_v60  ;;  %745 = vmatprep.mubr.bf16.mxu1 %v336_v23  ;;  %v310_v33 = vmax.f32 %v208_v26, 0.0 }
  0xe0   :  { %v210_v29 = vpop.f32.mrf.mxu0  ;;  %746 = vmatmul.mubr.bf16.vlgmr.msra.gmra.mxu1 %v337_v24 }
  0xe1   :  { %v211_v30 = vadd.f32 %v974_v60, %v210_v29  ;;  %v313_v31 = vmax.f32 %v219_v27, 0.0 }
  0xe2   :  { %v707_v32 = vpop.f32.mrf.mxu0 }
  0xe3   :  { %v311_v34 = vmax.f32 %v211_v30, 0.0  ;;  %v339_v38 = vpack.c.bf16 %v313_v31, %v312_v35  ;;  %v232_v42 = vadd.f32 %v707_v32, %v974_v60 }
  0xe4   :  { %v223_v36 = vpop.f32.mrf.mxu0 }
  0xe5   :  { %v338_v37 = vpack.c.bf16 %v311_v34, %v310_v33  ;;  %v224_v40 = vadd.f32 %v974_v60, %v223_v36  ;;  %v316_v49 = vmax.f32 %v232_v42, 0.0 }
  0xe6   :  { %v708_v39 = vpop.f32.mrf.mxu0 }
  0xe7   :  { %v235_v41 = vadd.f32 %v708_v39, %v974_v60  ;;  %749 = vmatprep.mubr.bf16.mxu1 %v338_v37  ;;  %v314_v47 = vmax.f32 %v224_v40, 0.0 }
  0xe8   :  { %v226_v43 = vpop.f32.mrf.mxu0  ;;  %750 = vmatmul.mubr.bf16.gmra.mxu1 %v339_v38 }
  0xe9   :  { %v227_v44 = vadd.f32 %v974_v60, %v226_v43  ;;  %v317_v45 = vmax.f32 %v235_v41, 0.0 }
  0xea   :  { %v711_v46 = vpop.f32.mrf.mxu0 }
  0xeb   :  { %v315_v48 = vmax.f32 %v227_v44, 0.0  ;;  %v341_v52 = vpack.c.bf16 %v317_v45, %v316_v49  ;;  %v248_v56 = vadd.f32 %v711_v46, %v974_v60  ;;  %v1011_v44 = vld [vmem:[%s1177_s4] ss:$0 sm:$0xff] }
  0xec   :  { %v239_v50 = vpop.f32.mrf.mxu0 }
  0xed   :  { %v340_v51 = vpack.c.bf16 %v315_v48, %v314_v47  ;;  %v240_v54 = vadd.f32 %v974_v60, %v239_v50  ;;  %v320_v0 = vmax.f32 %v248_v56, 0.0 }
  0xee   :  { %v712_v53 = vpop.f32.mrf.mxu0 }
  0xef   :  { %v251_v55 = vadd.f32 %v712_v53, %v974_v60  ;;  %753 = vmatprep.mubr.bf16.mxu1 %v340_v51  ;;  %v318_v62 = vmax.f32 %v240_v54, 0.0 }
  0xf0   :  { %v242_v57 = vpop.f32.mrf.mxu0  ;;  %754 = vmatmul.mubr.bf16.gmra.mxu1 %v341_v52 }
  0xf1   :  { %v243_v58 = vadd.f32 %v974_v60, %v242_v57  ;;  %v321_v59 = vmax.f32 %v251_v55, 0.0 }
  0xf2   :  { %v715_v61 = vpop.f32.mrf.mxu0 }
  0xf3   :  { %v319_v63 = vmax.f32 %v243_v58, 0.0  ;;  %v343_v3 = vpack.c.bf16 %v321_v59, %v320_v0  ;;  %v264_v7 = vadd.f32 %v715_v61, %v974_v60 }
  0xf4   :  { %v255_v1 = vpop.f32.mrf.mxu0 }
  0xf5   :  { %v342_v2 = vpack.c.bf16 %v319_v63, %v318_v62  ;;  %v256_v5 = vadd.f32 %v974_v60, %v255_v1  ;;  %v324_v14 = vmax.f32 %v264_v7, 0.0 }
  0xf6   :  { %v716_v4 = vpop.f32.mrf.mxu0 }
  0xf7   :  { %v267_v6 = vadd.f32 %v716_v4, %v974_v60  ;;  %757 = vmatprep.mubr.bf16.mxu1 %v342_v2  ;;  %v322_v12 = vmax.f32 %v256_v5, 0.0 }
  0xf8   :  { %v258_v8 = vpop.f32.mrf.mxu0  ;;  %758 = vmatmul.mubr.bf16.gmra.mxu1 %v343_v3 }
  0xf9   :  { %v259_v9 = vadd.f32 %v974_v60, %v258_v8  ;;  %v325_v10 = vmax.f32 %v267_v6, 0.0 }
  0xfa   :  { %v719_v11 = vpop.f32.mrf.mxu0 }
  0xfb   :  { %v323_v13 = vmax.f32 %v259_v9, 0.0  ;;  %v345_v17 = vpack.c.bf16 %v325_v10, %v324_v14  ;;  %v280_v21 = vadd.f32 %v719_v11, %v974_v60 }
  0xfc   :  { %v271_v15 = vpop.f32.mrf.mxu0 }
  0xfd   :  { %v344_v16 = vpack.c.bf16 %v323_v13, %v322_v12  ;;  %v272_v19 = vadd.f32 %v974_v60, %v271_v15  ;;  %v328_v28 = vmax.f32 %v280_v21, 0.0 }
  0xfe   :  { %v720_v18 = vpop.f32.mrf.mxu0 }
  0xff   :  { %v283_v20 = vadd.f32 %v720_v18, %v974_v60  ;;  %761 = vmatprep.mubr.bf16.mxu1 %v344_v16  ;;  %v326_v26 = vmax.f32 %v272_v19, 0.0 }
 0x100   :  { %v274_v22 = vpop.f32.mrf.mxu0  ;;  %762 = vmatmul.mubr.bf16.gmra.mxu1 %v345_v17 }
 0x101   :  { %v275_v23 = vadd.f32 %v974_v60, %v274_v22  ;;  %v329_v24 = vmax.f32 %v283_v20, 0.0 }
 0x102   :  { %v723_v25 = vpop.f32.mrf.mxu0 }
 0x103   :  { %v327_v27 = vmax.f32 %v275_v23, 0.0  ;;  %v347_v31 = vpack.c.bf16 %v329_v24, %v328_v28  ;;  %v296_v35 = vadd.f32 %v723_v25, %v974_v60 }
 0x104   :  { %v287_v29 = vpop.f32.mrf.mxu0 }
 0x105   :  { %v346_v30 = vpack.c.bf16 %v327_v27, %v326_v26  ;;  %v288_v33 = vadd.f32 %v974_v60, %v287_v29  ;;  %v332_v41 = vmax.f32 %v296_v35, 0.0 }
 0x106   :  { %v724_v32 = vpop.f32.mrf.mxu0 }
 0x107   :  { %v299_v34 = vadd.f32 %v724_v32, %v974_v60  ;;  %765 = vmatprep.mubr.bf16.mxu1 %v346_v30  ;;  %v330_v39 = vmax.f32 %v288_v33, 0.0 }
 0x108   :  { %v290_v36 = vpop.f32.mrf.mxu0  ;;  %766 = vmatmul.mubr.bf16.gmra.mxu1 %v347_v31 }
 0x109   :  { %v291_v37 = vadd.f32 %v974_v60, %v290_v36  ;;  %v333_v38 = vmax.f32 %v299_v34, 0.0 }
 0x10b   :  { %v331_v40 = vmax.f32 %v291_v37, 0.0  ;;  %v349_v43 = vpack.c.bf16 %v333_v38, %v332_v41 }
 0x10d   :  { %v348_v42 = vpack.c.bf16 %v331_v40, %v330_v39 }
 0x10f   :  { %769 = vmatprep.mubr.bf16.mxu1 %v348_v42 }
 0x110   :  { %770 = vmatmul.mubr.bf16.gmra.mxu1 %v349_v43 }
 0x198   :  { %v743_v45 = vpop.f32.mrf.mxu0 }
 0x199   :  { %v464_v46 = vadd.f32 %v743_v45, %v1011_v44 }
 0x19a   :  { %v455_v47 = vpop.f32.mrf.mxu0 }
 0x19b   :  { %585 = vst.msk [vmem:[%s1178_s5 + $0x10] sm:$0xff] %vm582_vm1, %v464_v46  ;;  %v456_v60 = vadd.f32 %v1011_v44, %v455_v47 }
 0x19c   :  { %v744_v48 = vpop.f32.mrf.mxu0 }
 0x19d   :  { %583 = vst.msk [vmem:[%s1178_s5] sm:$0xff] %vm582_vm1, %v456_v60  ;;  %v467_v49 = vadd.f32 %v744_v48, %v1011_v44 }
 0x19e   :  { %v458_v50 = vpop.f32.mrf.mxu0 }
 0x19f   :  { %586 = vst.msk [vmem:[%s1178_s5 + $0x18] sm:$0xff] %vm582_vm1, %v467_v49  ;;  %v459_v51 = vadd.f32 %v1011_v44, %v458_v50 }
 0x1a0   :  { %v747_v52 = vpop.f32.mrf.mxu1 }
 0x1a1   :  { %584 = vst.msk [vmem:[%s1178_s5 + $0x8] sm:$0xff] %vm582_vm1, %v459_v51  ;;  %v480_v53 = vadd.f32 %v747_v52, %v1011_v44 }
 0x1a2   :  { %v471_v54 = vpop.f32.mrf.mxu1 }
 0x1a3   :  { %589 = vst.msk [vmem:[%s1178_s5 + $0x30] sm:$0xff] %vm582_vm1, %v480_v53  ;;  %v472_v55 = vadd.f32 %v1011_v44, %v471_v54 }
 0x1a4   :  { %v748_v56 = vpop.f32.mrf.mxu1 }
 0x1a5   :  { %587 = vst.msk [vmem:[%s1178_s5 + $0x20] sm:$0xff] %vm582_vm1, %v472_v55  ;;  %v483_v57 = vadd.f32 %v748_v56, %v1011_v44 }
 0x1a6   :  { %v474_v58 = vpop.f32.mrf.mxu1 }
 0x1a7   :  { %590 = vst.msk [vmem:[%s1178_s5 + $0x38] sm:$0xff] %vm582_vm1, %v483_v57  ;;  %v475_v59 = vadd.f32 %v1011_v44, %v474_v58 }
 0x1a8   :  { %v751_v61 = vpop.f32.mrf.mxu1 }
 0x1a9   :  { %588 = vst.msk [vmem:[%s1178_s5 + $0x28] sm:$0xff] %vm582_vm1, %v475_v59  ;;  %v496_v62 = vadd.f32 %v751_v61, %v1011_v44 }
 0x1aa   :  { %v487_v63 = vpop.f32.mrf.mxu1 }
 0x1ab   :  { %593 = vst.msk [vmem:[%s1178_s5 + $0x50] sm:$0xff] %vm582_vm1, %v496_v62  ;;  %v488_v0 = vadd.f32 %v1011_v44, %v487_v63 }
 0x1ac   :  { %v752_v1 = vpop.f32.mrf.mxu1 }
 0x1ad   :  { %591 = vst.msk [vmem:[%s1178_s5 + $0x40] sm:$0xff] %vm582_vm1, %v488_v0  ;;  %v499_v2 = vadd.f32 %v752_v1, %v1011_v44 }
 0x1ae   :  { %v490_v3 = vpop.f32.mrf.mxu1 }
 0x1af   :  { %594 = vst.msk [vmem:[%s1178_s5 + $0x58] sm:$0xff] %vm582_vm1, %v499_v2  ;;  %v491_v4 = vadd.f32 %v1011_v44, %v490_v3 }
 0x1b0   :  { %v755_v5 = vpop.f32.mrf.mxu1 }
 0x1b1   :  { %592 = vst.msk [vmem:[%s1178_s5 + $0x48] sm:$0xff] %vm582_vm1, %v491_v4  ;;  %v512_v6 = vadd.f32 %v755_v5, %v1011_v44 }
 0x1b2   :  { %v503_v7 = vpop.f32.mrf.mxu1 }
 0x1b3   :  { %597 = vst.msk [vmem:[%s1178_s5 + $0x70] sm:$0xff] %vm582_vm1, %v512_v6  ;;  %v504_v8 = vadd.f32 %v1011_v44, %v503_v7 }
 0x1b4   :  { %v756_v9 = vpop.f32.mrf.mxu1 }
 0x1b5   :  { %595 = vst.msk [vmem:[%s1178_s5 + $0x60] sm:$0xff] %vm582_vm1, %v504_v8  ;;  %v515_v10 = vadd.f32 %v756_v9, %v1011_v44 }
 0x1b6   :  { %v506_v11 = vpop.f32.mrf.mxu1 }
 0x1b7   :  { %598 = vst.msk [vmem:[%s1178_s5 + $0x78] sm:$0xff] %vm582_vm1, %v515_v10  ;;  %v507_v12 = vadd.f32 %v1011_v44, %v506_v11 }
 0x1b8   :  { %v759_v13 = vpop.f32.mrf.mxu1 }
 0x1b9   :  { %596 = vst.msk [vmem:[%s1178_s5 + $0x68] sm:$0xff] %vm582_vm1, %v507_v12  ;;  %v528_v14 = vadd.f32 %v759_v13, %v1011_v44 }
 0x1ba   :  { %v519_v15 = vpop.f32.mrf.mxu1 }
 0x1bb   :  { %601 = vst.msk [vmem:[%s1178_s5 + $0x90] sm:$0xff] %vm582_vm1, %v528_v14  ;;  %v520_v16 = vadd.f32 %v1011_v44, %v519_v15 }
 0x1bc   :  { %v760_v17 = vpop.f32.mrf.mxu1 }
 0x1bd   :  { %599 = vst.msk [vmem:[%s1178_s5 + $0x80] sm:$0xff] %vm582_vm1, %v520_v16  ;;  %v531_v18 = vadd.f32 %v760_v17, %v1011_v44 }
 0x1be   :  { %v522_v19 = vpop.f32.mrf.mxu1 }
 0x1bf   :  { %602 = vst.msk [vmem:[%s1178_s5 + $0x98] sm:$0xff] %vm582_vm1, %v531_v18  ;;  %v523_v20 = vadd.f32 %v1011_v44, %v522_v19 }
 0x1c0   :  { %v763_v21 = vpop.f32.mrf.mxu1 }
 0x1c1   :  { %600 = vst.msk [vmem:[%s1178_s5 + $0x88] sm:$0xff] %vm582_vm1, %v523_v20  ;;  %v544_v22 = vadd.f32 %v763_v21, %v1011_v44 }
 0x1c2   :  { %v535_v23 = vpop.f32.mrf.mxu1 }
 0x1c3   :  { %605 = vst.msk [vmem:[%s1178_s5 + $0xb0] sm:$0xff] %vm582_vm1, %v544_v22  ;;  %v536_v24 = vadd.f32 %v1011_v44, %v535_v23 }
 0x1c4   :  { %v764_v25 = vpop.f32.mrf.mxu1 }
 0x1c5   :  { %603 = vst.msk [vmem:[%s1178_s5 + $0xa0] sm:$0xff] %vm582_vm1, %v536_v24  ;;  %v547_v26 = vadd.f32 %v764_v25, %v1011_v44 }
 0x1c6   :  { %v538_v27 = vpop.f32.mrf.mxu1 }
 0x1c7   :  { %606 = vst.msk [vmem:[%s1178_s5 + $0xb8] sm:$0xff] %vm582_vm1, %v547_v26  ;;  %v539_v28 = vadd.f32 %v1011_v44, %v538_v27 }
 0x1c8   :  { %v767_v29 = vpop.f32.mrf.mxu1 }
 0x1c9   :  { %604 = vst.msk [vmem:[%s1178_s5 + $0xa8] sm:$0xff] %vm582_vm1, %v539_v28  ;;  %v560_v30 = vadd.f32 %v767_v29, %v1011_v44 }
 0x1ca   :  { %v551_v31 = vpop.f32.mrf.mxu1 }
 0x1cb   :  { %609 = vst.msk [vmem:[%s1178_s5 + $0xd0] sm:$0xff] %vm582_vm1, %v560_v30  ;;  %v552_v32 = vadd.f32 %v1011_v44, %v551_v31 }
 0x1cc   :  { %v768_v33 = vpop.f32.mrf.mxu1 }
 0x1cd   :  { %607 = vst.msk [vmem:[%s1178_s5 + $0xc0] sm:$0xff] %vm582_vm1, %v552_v32  ;;  %v563_v34 = vadd.f32 %v768_v33, %v1011_v44 }
 0x1ce   :  { %v554_v35 = vpop.f32.mrf.mxu1 }
 0x1cf   :  { %610 = vst.msk [vmem:[%s1178_s5 + $0xd8] sm:$0xff] %vm582_vm1, %v563_v34  ;;  %v555_v36 = vadd.f32 %v1011_v44, %v554_v35 }
 0x1d0   :  { %v771_v37 = vpop.f32.mrf.mxu1 }
 0x1d1   :  { %608 = vst.msk [vmem:[%s1178_s5 + $0xc8] sm:$0xff] %vm582_vm1, %v555_v36  ;;  %v576_v38 = vadd.f32 %v771_v37, %v1011_v44 }
 0x1d2   :  { %v567_v39 = vpop.f32.mrf.mxu1 }
 0x1d3   :  { %613 = vst.msk [vmem:[%s1178_s5 + $0xf0] sm:$0xff] %vm582_vm1, %v576_v38  ;;  %v568_v40 = vadd.f32 %v1011_v44, %v567_v39 }
 0x1d4   :  { %v772_v41 = vpop.f32.mrf.mxu1 }
 0x1d5   :  { %611 = vst.msk [vmem:[%s1178_s5 + $0xe0] sm:$0xff] %vm582_vm1, %v568_v40  ;;  %v579_v42 = vadd.f32 %v772_v41, %v1011_v44 }
 0x1d6   :  { %v570_v43 = vpop.f32.mrf.mxu1 }
 0x1d7   :  { %614 = vst.msk [vmem:[%s1178_s5 + $0xf8] sm:$0xff] %vm582_vm1, %v579_v42  ;;  %v571_v45 = vadd.f32 %v1011_v44, %v570_v43 }
 0x1d9   :  { %612 = vst.msk [vmem:[%s1178_s5 + $0xe8] sm:$0xff] %vm582_vm1, %v571_v45 }

</bundles_post_ra>
